<compile_context>
chip_gen: v6e
topology: v6e:2x2x1
jax: 0.10.0
libtpu: 0.0.40
codegen_flags: <defaults>
</compile_context>

<pallas_src>
import functools

import jax
import jax.numpy as jnp
from jax import lax
from jax.experimental import pallas as pl
from jax.experimental.pallas import tpu as pltpu


# ----------------------------------------------------------------------------
# Generation-aware VMEM budget and tile targets
# ----------------------------------------------------------------------------
def _vmem_capacity_bytes():
    try:
        return int(pltpu.get_tpu_info().vmem_capacity_bytes)
    except Exception:
        return 64 * 1024 * 1024  # conservative (v7x-sized) fallback


VMEM_CAP = _vmem_capacity_bytes()
BIG_VMEM = VMEM_CAP >= 100 * 1024 * 1024            # v5e / v6e (128 MiB)
VMEM_LIMIT = min(int(VMEM_CAP * 3 // 4), 96 * 1024 * 1024)

ROW_TILE = 512 if BIG_VMEM else 256     # sublane (row) tiles
COL_TILE = 1024 if BIG_VMEM else 512    # lane / K tiles for plain matmuls
FFN_TILE = 1024 if BIG_VMEM else 512    # SwiGLU hidden-dim tile
ATTN_TILE = 512 if BIG_VMEM else 256    # q / kv sequence tiles


def _tile(dim, target, mult=8):
    """Largest divisor of `dim` <= target, preferring multiples of `mult`."""
    if dim <= target:
        return dim
    fallback = None
    for t in range(target, 0, -1):
        if dim % t:
            continue
        if t % mult == 0:
            return t
        if fallback is None:
            fallback = t
    # TODO(synk): zero-pad the dimension instead of accepting a degenerate tile.
    return fallback if fallback is not None else dim


def _ffn_tile(f):
    return _tile(f, FFN_TILE, mult=128)


def _rms(x, g, eps):
    var = jnp.mean(x * x, axis=-1, keepdims=True)
    return x * jax.lax.rsqrt(var + eps) * g


# ----------------------------------------------------------------------------
# Kernel 1: patch conv-as-matmul with fused ln_pre RMSNorm epilogue
# ----------------------------------------------------------------------------
def patch_embed_kernel(a_ref, b_ref, g_ref, o_ref, *, eps):
    acc = jnp.dot(a_ref[...], b_ref[...], preferred_element_type=jnp.float32)
    o_ref[...] = _rms(acc, g_ref[...], eps).astype(o_ref.dtype)


def patch_embed(patches, w_patch, g, eps):
    m, k0 = patches.shape
    _, d = w_patch.shape
    tm = _tile(m, ROW_TILE)
    return pl.pallas_call(
        functools.partial(patch_embed_kernel, eps=eps),
        grid=(m // tm,),
        in_specs=[
            pl.BlockSpec((tm, k0), lambda i: (i, 0)),
            pl.BlockSpec((k0, d), lambda i: (0, 0)),
            pl.BlockSpec((1, d), lambda i: (0, 0)),
        ],
        out_specs=pl.BlockSpec((tm, d), lambda i: (i, 0)),
        out_shape=jax.ShapeDtypeStruct((m, d), jnp.float32),
        compiler_params=pltpu.CompilerParams(
            dimension_semantics=("parallel",),
            vmem_limit_bytes=VMEM_LIMIT),
    )(patches, w_patch, g)


# ----------------------------------------------------------------------------
# Kernel 2: RMSNorm + QKV projection with RoPE (+ 1/sqrt(dh)) fused epilogue
# ----------------------------------------------------------------------------
def qkv_rope_kernel(x_ref, g_ref, w_ref, cos_ref, sin_ref,
                    q_ref, k_ref, v_ref, *, eps, n_heads, head_dim, scale):
    d = n_heads * head_dim
    half = d // 2
    dh2 = head_dim // 2

    xn = _rms(x_ref[...], g_ref[...], eps).astype(jnp.bfloat16)
    acc = jnp.dot(xn, w_ref[...], preferred_element_type=jnp.float32)  # (tm, 3D)

    # wq/wk columns are pre-permuted to [all heads even dims | all heads odd
    # dims] so the RoPE math is full-width (no per-head slicing needed here).
    q1 = acc[:, :half]
    q2 = acc[:, half:d]
    k1 = acc[:, d:d + half]
    k2 = acc[:, d + half:2 * d]
    v = acc[:, 2 * d:]

    cos = cos_ref[...]
    sin = sin_ref[...]
    rq1 = (q1 * cos - q2 * sin) * scale
    rq2 = (q2 * cos + q1 * sin) * scale
    rk1 = k1 * cos - k2 * sin
    rk2 = k2 * cos + k1 * sin

    # Re-interleave into a per-head-contiguous layout ([rot-even | rot-odd]
    # within each head) so attention does a single K=head_dim matmul per head.
    # One O(tm*D) relayout here, amortised over every (q, kv) tile pair later.
    q_parts, k_parts = [], []
    for h in range(n_heads):
        sl = slice(h * dh2, (h + 1) * dh2)
        q_parts += [rq1[:, sl], rq2[:, sl]]
        k_parts += [rk1[:, sl], rk2[:, sl]]
    q_ref[...] = jnp.concatenate(q_parts, axis=-1).astype(q_ref.dtype)
    k_ref[...] = jnp.concatenate(k_parts, axis=-1).astype(k_ref.dtype)
    v_ref[...] = v.astype(v_ref.dtype)


def qkv_rope_proj(x, g, wqkv, cos_all, sin_all, n_tokens, eps, n_heads, head_dim):
    m, d = x.shape
    tm = _tile(n_tokens, ROW_TILE)       # must divide N so RoPE rows line up
    blocks_per_img = n_tokens // tm
    scale = 1.0 / float(head_dim) ** 0.5
    out = jax.ShapeDtypeStruct((m, d), jnp.bfloat16)
    return pl.pallas_call(
        functools.partial(qkv_rope_kernel, eps=eps, n_heads=n_heads,
                          head_dim=head_dim, scale=scale),
        grid=(m // tm,),
        in_specs=[
            pl.BlockSpec((tm, d), lambda i: (i, 0)),
            pl.BlockSpec((1, d), lambda i: (0, 0)),
            pl.BlockSpec((d, 3 * d), lambda i: (0, 0)),
            pl.BlockSpec((tm, d // 2), lambda i: (i % blocks_per_img, 0)),
            pl.BlockSpec((tm, d // 2), lambda i: (i % blocks_per_img, 0)),
        ],
        out_specs=(
            pl.BlockSpec((tm, d), lambda i: (i, 0)),
            pl.BlockSpec((tm, d), lambda i: (i, 0)),
            pl.BlockSpec((tm, d), lambda i: (i, 0)),
        ),
        out_shape=(out, out, out),
        compiler_params=pltpu.CompilerParams(
            dimension_semantics=("parallel",),
            vmem_limit_bytes=VMEM_LIMIT),
    )(x, g, wqkv, cos_all, sin_all)


# ----------------------------------------------------------------------------
# Kernel 3: flash attention (online softmax, bf16 MXU operands)
# ----------------------------------------------------------------------------
def flash_attn_kernel(q_ref, k_ref, v_ref, o_ref, m_sc, l_sc, acc_sc,
                      *, n_heads, head_dim):
    ki = pl.program_id(2)

    @pl.when(ki == 0)
    def _():
        m_sc[...] = jnp.full_like(m_sc, -jnp.inf)
        l_sc[...] = jnp.zeros_like(l_sc)
        acc_sc[...] = jnp.zeros_like(acc_sc)

    q = q_ref[0]          # (tq, D) bf16, RoPE + 1/sqrt(dh) already applied
    k = k_ref[0]          # (tk, D) bf16, RoPE already applied
    v = v_ref[0]          # (tk, D) bf16

    for h in range(n_heads):
        hs = slice(h * head_dim, (h + 1) * head_dim)
        s = lax.dot_general(q[:, hs], k[:, hs],
                            (((1,), (1,)), ((), ())),
                            preferred_element_type=jnp.float32)   # (tq, tk)
        m_prev = m_sc[h]
        m_new = jnp.maximum(m_prev, jnp.max(s, axis=-1, keepdims=True))
        alpha = jnp.exp(m_prev - m_new)
        p = jnp.exp(s - m_new)
        l_sc[h] = alpha * l_sc[h] + jnp.sum(p, axis=-1, keepdims=True)
        acc_sc[h] = alpha * acc_sc[h] + jnp.dot(
            p.astype(jnp.bfloat16), v[:, hs],
            preferred_element_type=jnp.float32)
        m_sc[h] = m_new

    @pl.when(ki == pl.num_programs(2) - 1)
    def _():
        for h in range(n_heads):
            o_ref[0, :, h * head_dim:(h + 1) * head_dim] = (
                acc_sc[h] / l_sc[h]).astype(o_ref.dtype)


def flash_attention(q, k, v, n_heads, head_dim):
    b, n, d = q.shape
    tq = _tile(n, ATTN_TILE)
    tk = _tile(n, ATTN_TILE)
    return pl.pallas_call(
        functools.partial(flash_attn_kernel, n_heads=n_heads,
                          head_dim=head_dim),
        grid=(b, n // tq, n // tk),
        in_specs=[
            pl.BlockSpec((1, tq, d), lambda bi, qi, ki: (bi, qi, 0)),
            pl.BlockSpec((1, tk, d), lambda bi, qi, ki: (bi, ki, 0)),
            pl.BlockSpec((1, tk, d), lambda bi, qi, ki: (bi, ki, 0)),
        ],
        out_specs=pl.BlockSpec((1, tq, d), lambda bi, qi, ki: (bi, qi, 0)),
        out_shape=jax.ShapeDtypeStruct((b, n, d), jnp.bfloat16),
        scratch_shapes=[
            pltpu.VMEM((n_heads, tq, 1), jnp.float32),
            pltpu.VMEM((n_heads, tq, 1), jnp.float32),
            pltpu.VMEM((n_heads, tq, head_dim), jnp.float32),
        ],
        compiler_params=pltpu.CompilerParams(
            dimension_semantics=("parallel", "parallel", "arbitrary"),
            vmem_limit_bytes=VMEM_LIMIT),
    )(q, k, v)


# ----------------------------------------------------------------------------
# Kernel 4: tiled matmul with fused residual add (attention output projection)
# ----------------------------------------------------------------------------
def matmul_res_kernel(a_ref, b_ref, r_ref, o_ref, acc_ref):
    kk = pl.program_id(2)

    @pl.when(kk == 0)
    def _():
        acc_ref[...] = jnp.zeros_like(acc_ref)

    acc_ref[...] += jnp.dot(a_ref[...], b_ref[...],
                            preferred_element_type=jnp.float32)

    @pl.when(kk == pl.num_programs(2) - 1)
    def _():
        o_ref[...] = (r_ref[...] + acc_ref[...]).astype(o_ref.dtype)


def matmul_residual(a, b, res):
    m, kdim = a.shape
    _, n_out = b.shape
    tm = _tile(m, ROW_TILE)
    tn = _tile(n_out, COL_TILE, mult=128)
    tk = _tile(kdim, COL_TILE, mult=128)
    return pl.pallas_call(
        matmul_res_kernel,
        grid=(m // tm, n_out // tn, kdim // tk),
        in_specs=[
            pl.BlockSpec((tm, tk), lambda i, j, k: (i, k)),
            pl.BlockSpec((tk, tn), lambda i, j, k: (k, j)),
            pl.BlockSpec((tm, tn), lambda i, j, k: (i, j)),
        ],
        out_specs=pl.BlockSpec((tm, tn), lambda i, j, k: (i, j)),
        out_shape=jax.ShapeDtypeStruct((m, n_out), jnp.float32),
        scratch_shapes=[pltpu.VMEM((tm, tn), jnp.float32)],
        compiler_params=pltpu.CompilerParams(
            dimension_semantics=("parallel", "parallel", "arbitrary"),
            vmem_limit_bytes=VMEM_LIMIT),
    )(a, b, res)


# ----------------------------------------------------------------------------
# Kernel 5: fused RMSNorm + SwiGLU FFN + residual (hidden dim tiled,
#           norm hoisted to a bf16 scratch, w1/w3 packed into one slab)
# ----------------------------------------------------------------------------
def ffn_kernel(x_ref, g_ref, w13_ref, w2_ref, o_ref, xn_ref, acc_ref,
               *, eps, tf):
    j = pl.program_id(1)

    @pl.when(j == 0)
    def _():
        acc_ref[...] = jnp.zeros_like(acc_ref)
        xn_ref[...] = _rms(x_ref[...], g_ref[...], eps).astype(xn_ref.dtype)

    xn = xn_ref[...]
    h13 = jnp.dot(xn, w13_ref[...], preferred_element_type=jnp.float32)
    h1 = h13[:, :tf]
    h3 = h13[:, tf:]
    h = (h1 * jax.nn.sigmoid(h1)) * h3
    acc_ref[...] += jnp.dot(h.astype(jnp.bfloat16), w2_ref[...],
                            preferred_element_type=jnp.float32)

    @pl.when(j == pl.num_programs(1) - 1)
    def _():
        o_ref[...] = (x_ref[...] + acc_ref[...]).astype(o_ref.dtype)


def swiglu_ffn(x, g, w13, w2, eps):
    m, d = x.shape
    f = w2.shape[0]
    tm = _tile(m, ROW_TILE)
    tf = _ffn_tile(f)
    return pl.pallas_call(
        functools.partial(ffn_kernel, eps=eps, tf=tf),
        grid=(m // tm, f // tf),
        in_specs=[
            pl.BlockSpec((tm, d), lambda i, j: (i, 0)),
            pl.BlockSpec((1, d), lambda i, j: (0, 0)),
            pl.BlockSpec((d, 2 * tf), lambda i, j: (0, j)),
            pl.BlockSpec((tf, d), lambda i, j: (j, 0)),
        ],
        out_specs=pl.BlockSpec((tm, d), lambda i, j: (i, 0)),
        out_shape=jax.ShapeDtypeStruct((m, d), jnp.float32),
        scratch_shapes=[pltpu.VMEM((tm, d), jnp.bfloat16),
                        pltpu.VMEM((tm, d), jnp.float32)],
        compiler_params=pltpu.CompilerParams(
            dimension_semantics=("parallel", "arbitrary"),
            vmem_limit_bytes=VMEM_LIMIT),
    )(x, g, w13, w2)


# ----------------------------------------------------------------------------
# RoPE tables (port of precompute_freqs_cis_2d, stored as cos/sin)
# ----------------------------------------------------------------------------
def rope_tables(hp, wp, head_dim, theta):
    freqs = 1.0 / (
        theta ** (jnp.arange(0, head_dim, 2, dtype=jnp.float32) / head_dim))
    fh = jnp.outer(jnp.arange(hp, dtype=jnp.float32), freqs[0::2])
    fw = jnp.outer(jnp.arange(wp, dtype=jnp.float32), freqs[1::2])
    ang = jnp.concatenate(
        [jnp.broadcast_to(fh[:, None, :], (hp, wp, fh.shape[-1])),
         jnp.broadcast_to(fw[None, :, :], (hp, wp, fw.shape[-1]))],
        axis=-1)  # (Hp, Wp, head_dim // 2)
    n = hp * wp
    return jnp.cos(ang).reshape(n, -1), jnp.sin(ang).reshape(n, -1)


# ----------------------------------------------------------------------------
# Parameters (deterministic synthetic init; matrices stored in bf16)
# ----------------------------------------------------------------------------
def init_params(key, cfg):
    d = cfg["dim"]
    c = cfg["num_channels"]
    p = cfg["patch_size"]
    f = cfg["ffn_hidden_size"]

    def nrm(k, shape, scale=0.02):
        return scale * jax.random.normal(k, shape, dtype=jnp.float32)

    keys = jax.random.split(key, 2 + 9 * cfg["n_layers"])
    params = {
        "patch_conv": nrm(keys[0], (d, c, p, p)).astype(jnp.bfloat16),
        "ln_pre": 1.0 + nrm(keys[1], (d,), 0.1),
        "layers": [],
    }
    ki = 2
    for _ in range(cfg["n_layers"]):
        lp = {
            "attn_norm": 1.0 + nrm(keys[ki + 0], (d,), 0.1),
            "wq": nrm(keys[ki + 1], (d, d)).astype(jnp.bfloat16),
            "wk": nrm(keys[ki + 2], (d, d)).astype(jnp.bfloat16),
            "wv": nrm(keys[ki + 3], (d, d)).astype(jnp.bfloat16),
            "wo": nrm(keys[ki + 4], (d, d)).astype(jnp.bfloat16),
            "ffn_norm": 1.0 + nrm(keys[ki + 5], (d,), 0.1),
            "w1": nrm(keys[ki + 6], (d, f)).astype(jnp.bfloat16),
            "w3": nrm(keys[ki + 7], (d, f)).astype(jnp.bfloat16),
            "w2": nrm(keys[ki + 8], (f, d)).astype(jnp.bfloat16),
        }
        params["layers"].append(lp)
        ki += 9
    return params


def _pack_w13(w1, w3, tf):
    """Interleave w1/w3 column tiles so FFN block j = [w1 tile j | w3 tile j]."""
    d, f = w1.shape
    nt = f // tf
    packed = jnp.concatenate(
        [w1.reshape(d, nt, tf), w3.reshape(d, nt, tf)], axis=2)
    return packed.reshape(d, 2 * f)


def prepare_kernel_params(params, cfg):
    """Fold the RoPE even/odd split into wq/wk, fuse QKV and w1/w3 weights."""
    d = cfg["dim"]
    nh = cfg["n_heads"]
    dh = d // nh
    dh2 = dh // 2
    c = cfg["num_channels"]
    p = cfg["patch_size"]
    f = cfg["ffn_hidden_size"]
    tf = _ffn_tile(f)

    # [all heads even dims | all heads odd dims]
    base = jnp.arange(nh)[:, None] * dh + 2 * jnp.arange(dh2)[None, :]
    perm = jnp.concatenate([base.reshape(-1), (base + 1).reshape(-1)])

    kp = {
        "w_patch": params["patch_conv"].reshape(d, c * p * p).T,   # (C*P*P, D)
        "ln_pre": params["ln_pre"].reshape(1, d),
        "layers": [],
    }
    for lp in params["layers"]:
        kp["layers"].append({
            "attn_norm": lp["attn_norm"].reshape(1, d),
            "wqkv": jnp.concatenate(
                [lp["wq"][:, perm], lp["wk"][:, perm], lp["wv"]], axis=1),
            "wo": lp["wo"],
            "ffn_norm": lp["ffn_norm"].reshape(1, d),
            "w13": _pack_w13(lp["w1"], lp["w3"], tf),
            "w2": lp["w2"],
        })
    return kp


# ----------------------------------------------------------------------------
# Pallas-based forward pass
# ----------------------------------------------------------------------------
def vit_forward(x, kp, cfg):
    b, c, hh, ww = x.shape
    p = cfg["patch_size"]
    d = cfg["dim"]
    nh = cfg["n_heads"]
    eps = cfg["norm_eps"]
    hp, wp = hh // p, ww // p
    n = hp * wp
    m = b * n
    dh = d // nh

    # patch_conv (stride = kernel = patch_size, no bias) == matmul on patches;
    # the bf16 cast rides the transpose copy XLA performs anyway.
    patches = (
        x.reshape(b, c, hp, p, wp, p)
        .transpose(0, 2, 4, 1, 3, 5)
        .reshape(m, c * p * p)
        .astype(jnp.bfloat16))
    tok = patch_embed(patches, kp["w_patch"], kp["ln_pre"], eps)    # (M, D) f32

    cos, sin = rope_tables(hp, wp, dh, cfg["rope_theta"])           # (N, dh/2)
    cos_all = jnp.tile(cos, (1, nh))                                # (N, D/2)
    sin_all = jnp.tile(sin, (1, nh))

    for lp in kp["layers"]:
        q, k, v = qkv_rope_proj(tok, lp["attn_norm"], lp["wqkv"],
                                cos_all, sin_all, n, eps, nh, dh)   # (M,D) bf16
        attn = flash_attention(q.reshape(b, n, d), k.reshape(b, n, d),
                               v.reshape(b, n, d), nh, dh)          # (B,N,D) bf16
        tok = matmul_residual(attn.reshape(m, d), lp["wo"], tok)    # (M, D) f32
        tok = swiglu_ffn(tok, lp["ffn_norm"], lp["w13"], lp["w2"], eps)
    return tok.reshape(b, n, d)


# ----------------------------------------------------------------------------
# Pure-JAX reference (PyTorch semantics incl. interleaved RoPE; mirrors the
# kernel's bf16-operand / f32-accumulate matmul policy)
# ----------------------------------------------------------------------------
def reference_forward(x, params, cfg):
    b, c, hh, ww = x.shape
    p = cfg["patch_size"]
    d = cfg["dim"]
    nh = cfg["n_heads"]
    eps = cfg["norm_eps"]
    hp, wp = hh // p, ww // p
    n = hp * wp
    m = b * n
    dh = d // nh
    scale = 1.0 / float(dh) ** 0.5

    def bdot(a, w):
        return jnp.dot(a.astype(jnp.bfloat16), w.astype(jnp.bfloat16),
                       preferred_element_type=jnp.float32)

    def rms(v, wgt):
        v = v.astype(jnp.float32)
        return v * jax.lax.rsqrt(jnp.mean(v * v, -1, keepdims=True) + eps) * wgt

    patches = (
        x.reshape(b, c, hp, p, wp, p)
        .transpose(0, 2, 4, 1, 3, 5)
        .reshape(m, c * p * p))
    wpc = params["patch_conv"].reshape(d, c * p * p)
    tok = rms(bdot(patches, wpc.T), params["ln_pre"]).reshape(b, n, d)

    cos, sin = rope_tables(hp, wp, dh, cfg["rope_theta"])
    cosb = cos[None, :, None, :]
    sinb = sin[None, :, None, :]

    def rope_interleaved(t):
        tr = t.reshape(b, n, nh, dh // 2, 2)
        e, o = tr[..., 0], tr[..., 1]
        oe = e * cosb - o * sinb
        oo = e * sinb + o * cosb
        return jnp.stack([oe, oo], axis=-1).reshape(b, n, nh, dh)

    for lp in params["layers"]:
        xn = rms(tok, lp["attn_norm"]).reshape(m, d)
        q = bdot(xn, lp["wq"]).reshape(b, n, nh, dh)
        k = bdot(xn, lp["wk"]).reshape(b, n, nh, dh)
        v = bdot(xn, lp["wv"]).reshape(b, n, nh, dh).astype(jnp.bfloat16)
        q = (rope_interleaved(q) * scale).astype(jnp.bfloat16)
        k = rope_interleaved(k).astype(jnp.bfloat16)
        s = jnp.einsum("bqhd,bkhd->bhqk", q, k,
                       preferred_element_type=jnp.float32)
        s_max = jnp.max(s, axis=-1, keepdims=True)
        pr = jnp.exp(s - s_max)
        denom = jnp.sum(pr, axis=-1, keepdims=True)
        o = jnp.einsum("bhqk,bkhd->bqhd", pr.astype(jnp.bfloat16), v,
                       preferred_element_type=jnp.float32)
        o = (o / jnp.swapaxes(denom, 1, 2)).reshape(m, d)
        tok = tok + bdot(o, lp["wo"]).reshape(b, n, d)
        xn2 = rms(tok, lp["ffn_norm"]).reshape(m, d)
        h1 = bdot(xn2, lp["w1"])
        h3 = bdot(xn2, lp["w3"])
        tok = tok + bdot(jax.nn.silu(h1) * h3, lp["w2"]).reshape(b, n, d)
    return tok


# ----------------------------------------------------------------------------
if __name__ == "__main__":
    cfg = dict(
        dim=32,
        num_channels=4,
        patch_size=4,
        n_layers=2,
        n_heads=2,
        ffn_hidden_size=64,
        norm_eps=1e-5,
        image_size=16,
        rope_theta=1000000.0,
    )

    key = jax.random.PRNGKey(0)
    kx, kparm = jax.random.split(key)
    x = jax.random.normal(kx, (2, cfg["num_channels"], 16, 16), dtype=jnp.float32)
    params = init_params(kparm, cfg)
    kparams = prepare_kernel_params(params, cfg)

    out = jax.block_until_ready(vit_forward(x, kparams, cfg))
    ref = jax.block_until_ready(reference_forward(x, params, cfg))

    assert out.shape == ref.shape == (2, 16, cfg["dim"])
    max_diff = float(jnp.max(jnp.abs(out - ref)))
    assert max_diff < 5e-3, max_diff

    print("KERNEL_OK")
</pallas_src>

<mosaic_0001>
module attributes {stable_mosaic.version = 11 : i64} {
  func.func @patch_embed_kernel(%arg0: i32, %arg1: memref<32x64xbf16, #tpu.memory_space<vmem>>, %arg2: memref<64x32xbf16, #tpu.memory_space<vmem>>, %arg3: memref<1x32xf32, #tpu.memory_space<vmem>>, %arg4: memref<32x32xf32, #tpu.memory_space<vmem>>) attributes {dimension_semantics = [#tpu.dimension_semantics<parallel>], iteration_bounds = array<i64: 1>, scalar_prefetch = 0 : i64, scratch_operands = 0 : i64, tpu.core_type = #tpu.core_type<tc>, window_params = [{transform_indices = @transform_0, window_bounds = array<i64: 32, 64>}, {pipeline_mode = #tpu.pipeline_mode<synchronous>, transform_indices = @transform_1, window_bounds = array<i64: 64, 32>}, {pipeline_mode = #tpu.pipeline_mode<synchronous>, transform_indices = @transform_2, window_bounds = array<i64: 1, 32>}, {transform_indices = @transform_3, window_bounds = array<i64: 32, 32>}]} {
    %c0 = arith.constant 0 : index
    %c0_0 = arith.constant 0 : index
    %0 = vector.load %arg1[%c0, %c0_0] : memref<32x64xbf16, #tpu.memory_space<vmem>>, vector<32x64xbf16>
    %c0_1 = arith.constant 0 : index
    %c0_2 = arith.constant 0 : index
    %1 = vector.load %arg2[%c0_1, %c0_2] : memref<64x32xbf16, #tpu.memory_space<vmem>>, vector<64x32xbf16>
    %cst = arith.constant dense<0.000000e+00> : vector<32x32xf32>
    %2 = tpu.matmul %0, %1, %cst {dimension_numbers = #tpu.dot_dimension_numbers<[1], [0], [0], [1], [0, 0, 1, 1], [], []>} : vector<32x64xbf16>, vector<64x32xbf16>, vector<32x32xf32> -> vector<32x32xf32>
    %c0_3 = arith.constant 0 : index
    %c0_4 = arith.constant 0 : index
    %3 = vector.load %arg3[%c0_3, %c0_4] : memref<1x32xf32, #tpu.memory_space<vmem>>, vector<1x32xf32>
    %4 = arith.mulf %2, %2 : vector<32x32xf32>
    %cst_5 = arith.constant dense<0.000000e+00> : vector<32xf32>
    %5 = vector.multi_reduction <add>, %4, %cst_5 [1] : vector<32x32xf32> to vector<32xf32>
    %6 = vector.shape_cast %5 : vector<32xf32> to vector<32x1xf32>
    %cst_6 = arith.constant 3.200000e+01 : f32
    %7 = vector.broadcast %cst_6 : f32 to vector<32x1xf32>
    %8 = arith.divf %6, %7 : vector<32x1xf32>
    %cst_7 = arith.constant 9.99999974E-6 : f32
    %9 = vector.broadcast %cst_7 : f32 to vector<32x1xf32>
    %10 = arith.addf %8, %9 : vector<32x1xf32>
    %11 = math.rsqrt %10 : vector<32x1xf32>
    %12 = vector.broadcast %11 : vector<32x1xf32> to vector<32x32xf32>
    %13 = arith.mulf %2, %12 : vector<32x32xf32>
    %14 = vector.broadcast %3 : vector<1x32xf32> to vector<32x32xf32>
    %15 = arith.mulf %13, %14 : vector<32x32xf32>
    %c0_8 = arith.constant 0 : index
    %c0_9 = arith.constant 0 : index
    %16 = vector.load %arg4[%c0_8, %c0_9] : memref<32x32xf32, #tpu.memory_space<vmem>>, vector<32x32xf32>
    tpu.vector_store %arg4[%c0_8, %c0_9], %15 {strides = array<i32>} : memref<32x32xf32, #tpu.memory_space<vmem>>, vector<32x32xf32>,
    return
  }
  func.func @transform_0(%arg0: i32) -> (i32, i32) {
    %c0_i32 = arith.constant 0 : i32
    %c0_i32_0 = arith.constant 0 : i32
    return %arg0, %c0_i32 : i32, i32
  }
  func.func @transform_1(%arg0: i32) -> (i32, i32) {
    %c0_i32 = arith.constant 0 : i32
    %c0_i32_0 = arith.constant 0 : i32
    %c0_i32_1 = arith.constant 0 : i32
    return %c0_i32, %c0_i32_0 : i32, i32
  }
  func.func @transform_2(%arg0: i32) -> (i32, i32) {
    %c0_i32 = arith.constant 0 : i32
    %c0_i32_0 = arith.constant 0 : i32
    %c0_i32_1 = arith.constant 0 : i32
    return %c0_i32, %c0_i32_0 : i32, i32
  }
  func.func @transform_3(%arg0: i32) -> (i32, i32) {
    %c0_i32 = arith.constant 0 : i32
    %c0_i32_0 = arith.constant 0 : i32
    return %arg0, %c0_i32 : i32, i32
  }
}

</mosaic_0001>

<bundles_post_ra>
// kernel: tpu_custom_call.1
= control target key start
LH: loop header
LB: loop body
LE: loop exit
PB: predicated region body
PF: predicated region fallthrough
CT: control target
= control target key end

     0   :  { %vm62_vm0 = vcmask 523264   ;;  %s304_s0 = inlined_call_operand.vmem [shape: bf16[32,64], index: 0, kind: input, shape index: {}]   ;;  %s305_s1 = inlined_call_operand.vmem [shape: bf16[64,32], index: 1, kind: input, shape index: {}]   ;;  %s306_s2 = inlined_call_operand.vmem [shape: f32[1,32], index: 2, kind: input, shape index: {}]   ;;  %s307_s3 = inlined_call_operand.hbm [shape: f32[32,32], index: 3, kind: output, shape index: {}]  }
   0x1   :  { %v213_v0 = vld [vmem:[%s305_s1 + $0x18] sm:$0xff]   ;;  %v214_v1 = vld [vmem:[%s305_s1 + $0x10] sm:$0xff]   ;;  %v215_v2 = vld [vmem:[%s305_s1 + $0x8] sm:$0xff]  }
   0x2   :  { %198 = vmatprep.subr.bf16.mxu0 %v213_v0  ;;  %v217_v3 = vld [vmem:[%s304_s0] sm:$0xff]  }
   0x3   :  { %199 = vmatpush3.bf16.msra.mxu0 %v213_v0  ;;  %206 = vmatprep.mubr.msk.bf16.mxu0 %vm62_vm0, %v217_v3 }
   0x4   :  { %200 = vmatprep.subr.bf16.mxu0 %v214_v1 }
   0x5   :  { %8 = vsyncpa [#allocation3], 0  ;;  %v216_v4 = vld [vmem:[%s305_s1] sm:$0xff]   ;;  %v218_v5 = vld [vmem:[%s304_s0 + $0x8] sm:$0xff]   ;;  %vm123_vm1 = vcmask 261120   ;;  %s249_s24 = smov [#allocation2]  }
   0x6   :  { %v191_v31 = vld [vmem:[%s306_s2] ss:$0 sm:$0xff]  ;;  %s172_s25 = sshll.u32 %s249_s24, 4  ;;  %s173_s25 = int_to_ptr.vmem [resolvable:$true] %s172_s25 }
   0x7   :  { %201 = vmatpush3.bf16.msra.mxu0 %v214_v1  ;;  %s227_s2 = scalar_lea.vmem %s173_s25, 512  ;;  %p232_p1 = scmp.lt.s32.totalorder %s173_s25, %s173_s25 }
   0x8   :  { %202 = vmatprep.subr.bf16.mxu0 %v215_v2  ;;  %p228_p0 = scmp.ne.s32.totalorder %s173_s25, %s227_s2  ;;  %p233_p2 = scmp.lt.s32.totalorder %s227_s2, %s227_s2 }
   0xa   :  { %p234_p3 = por %p233_p2, %p232_p1 }
   0xb   :  { %203 = vmatpush3.bf16.msra.mxu0 %v215_v2 }
   0xc   :  { %204 = vmatprep.subr.bf16.mxu0 %v216_v4  ;;  %p235_p4 = pnand %p234_p3, %p228_p0 }
   0xf   :  { %205 = vmatpush3.bf16.msra.mxu0 %v216_v4 }
  0x12   :  { %207 = vmatmul.mubr.msk.bf16.vlgmr.msra.gmra.mxu0 %vm62_vm0, %v218_v5 }
  0xd2   :  { %v208_v6 = vpop.f32.mrf.mxu0 }
  0xd3   :  { %v121_v7 = vmul.f32 %v208_v6, %v208_v6 }
  0xd4   :  { %v103_v8 = vpop.f32.mrf.mxu0 }
  0xd5   :  { %v130_v9 = vsel %vm123_vm1, %v121_v7, 0.0  ;;  %v119_v10 = vmul.f32 %v103_v8, %v103_v8 }
  0xd6   :  { %131 = vadd.xlane.f32.xlu1 %v130_v9  ;;  %v209_v11 = vpop.f32.mrf.mxu0 }
  0xd7   :  { %v122_v12 = vmul.f32 %v209_v11, %v209_v11  ;;  %v124_v13 = vsel %vm123_vm1, %v119_v10, 0.0 }
  0xd8   :  { %125 = vadd.xlane.f32.xlu0 %v124_v13  ;;  %v106_v14 = vpop.f32.mrf.mxu0 }
  0xd9   :  { %v120_v15 = vmul.f32 %v106_v14, %v106_v14  ;;  %v133_v16 = vsel %vm123_vm1, %v122_v12, 0.0 }
  0xda   :  { %134 = vadd.xlane.f32.xlu1 %v133_v16 }
  0xdb   :  { %v127_v17 = vsel %vm123_vm1, %v120_v15, 0.0 }
  0xdc   :  { %128 = vadd.xlane.f32.xlu0 %v127_v17 }
 0x15f   :  { %v132_v18 = vpop.xlane.xlu1 %131 }
 0x160   :  { %v139_v19 = vmul.f32 0.03125, %v132_v18 }
 0x161   :  { %v126_v20 = vpop.xlane.xlu0 %125 }
 0x162   :  { %v143_v21 = vadd.f32 1e-05, %v139_v19  ;;  %v137_v22 = vmul.f32 0.03125, %v126_v20 }
 0x163   :  { %v135_v23 = vpop.xlane.xlu1 %134 }
 0x164   :  { %219 = vrsqrt.f32 %v143_v21  ;;  %v141_v24 = vadd.f32 1e-05, %v137_v22  ;;  %v140_v25 = vmul.f32 0.03125, %v135_v23 }
 0x165   :  { %v129_v26 = vpop.xlane.xlu0 %128 }
 0x166   :  { %221 = vrsqrt.f32 %v141_v24  ;;  %v144_v27 = vadd.f32 1e-05, %v140_v25  ;;  %v138_v28 = vmul.f32 0.03125, %v129_v26 }
 0x168   :  { %223 = vrsqrt.f32 %v144_v27  ;;  %v142_v29 = vadd.f32 1e-05, %v138_v28 }
 0x16a   :  { %225 = vrsqrt.f32 %v142_v29 }
 0x171   :  { %v220_v30 = vpop.eup %219 }
 0x172   :  { %v151_v32 = vmul.f32 %v220_v30, %v208_v6 }
 0x173   :  { %v222_v33 = vpop.eup %221 }
 0x174   :  { %v149_v34 = vmul.f32 %v222_v33, %v103_v8  ;;  %v161_v35 = vmul.f32 %v191_v31, %v151_v32 }
 0x175   :  { %v224_v36 = vpop.eup %223 }
 0x176   :  { %v152_v37 = vmul.f32 %v224_v36, %v209_v11  ;;  %v159_v38 = vmul.f32 %v191_v31, %v149_v34  ;;  %165 = vst.msk [vmem:[#allocation2 + $0x10] sm:$0xff] %vm123_vm1, %v161_v35 }
 0x177   :  { %v226_v39 = vpop.eup %225 }
 0x178   :  { %v162_v40 = vmul.f32 %v191_v31, %v152_v37  ;;  %v150_v41 = vmul.f32 %v226_v39, %v106_v14  ;;  %163 = vst.msk [vmem:[#allocation2] sm:$0xff] %vm123_vm1, %v159_v38 }
 0x17a   :  { %166 = vst.msk [vmem:[#allocation2 + $0x18] sm:$0xff] %vm123_vm1, %v162_v40  ;;  %v160_v42 = vmul.f32 %v191_v31, %v150_v41 }
 0x17c   :  { %164 = vst.msk [vmem:[#allocation2 + $0x8] sm:$0xff] %vm123_vm1, %v160_v42 }
 0x17d   :  { %238 = shalt.err (!%p235_p4)
}
 0x17e   :  { %s250_s26 = smov 128   ;;  %s251_s27 = smov 8  }
 0x17f   :  { %178 = dma.vmem_to_hbm [thread:$0]  %s173_s25, 512, %s307_s3, [#allocation3], %s250_s26, %s250_s26, %s251_s27  }
 0x180   :  { %247 = dma.done.wait [#allocation3], 512  }
 0x181   :  { %248 = vsyncadd [#allocation3], 4294966784 }
 0x182   :  { %182 = vsyncpa [#allocation3], 1 }

</bundles_post_ra>
